<compile_context>
chip_gen: v6e
topology: v6e:2x2x1
jax: 0.10.0
libtpu: 0.0.40
codegen_flags: <defaults>
</compile_context>

<pallas_src>
import functools

import jax
import jax.numpy as jnp
from jax.experimental import pallas as pl
from jax.experimental.pallas import tpu as pltpu


def _round_up(x: int, m: int) -> int:
    return (x + m - 1) // m * m


def _maxpool2x2_kernel(x_ref, o_ref, tr_ref, *, rb: int, wout: int):
    """Pool a (2*RB, W) row slab into a (RB, Wout) output block.

    x_ref rows are image rows (W on lanes, fully dense).  Height pooling uses
    sublane-strided ref loads.  Width pooling transposes the height-pooled slab
    (XLU) into VMEM scratch so the stride-2 window max is again a sublane-strided
    ref load, then transposes back for a dense output store.
    """
    even_h = x_ref[pl.ds(0, rb, stride=2), :]        # rows 0,2,4,...  -> (RB, W)
    odd_h = x_ref[pl.ds(1, rb, stride=2), :]         # rows 1,3,5,...  -> (RB, W)
    hmax = jnp.maximum(even_h, odd_h)                # height-pooled   -> (RB, W)

    tr_ref[...] = hmax.T                             # (W, RB): width now on sublanes
    even_w = tr_ref[pl.ds(0, wout, stride=2), :]     # cols 0,2,4,...  -> (Wout, RB)
    odd_w = tr_ref[pl.ds(1, wout, stride=2), :]      # cols 1,3,5,...  -> (Wout, RB)
    o_ref[...] = jnp.maximum(even_w, odd_w).T        # (RB, Wout)


def _vmem_limit_and_budget() -> tuple:
    """Generation-aware scoped-VMEM limit + per-step block budget (padded bytes)."""
    cap = None
    try:
        cap = getattr(pltpu.get_tpu_info(), "vmem_capacity_bytes", None)
    except Exception:
        cap = None
    if not cap:
        cap = 64 * 1024 * 1024            # conservative fallback: v7x-sized VMEM
    # v5e/v6e (128 MiB physical) -> 64 MiB scoped; v7x (64 MiB physical) -> 32 MiB scoped.
    limit = min(64 * 1024 * 1024, max(cap // 2, 16 * 1024 * 1024))
    budget = limit // 2                   # headroom for Mosaic-internal scratch
    return limit, budget


def _pick_block_rows(r_out: int, w_in: int, w_out: int, itemsize: int,
                     budget_bytes: int) -> int:
    """Pick RB (output rows per grid step) using padded, double-buffered VMEM bytes."""

    def step_bytes(rb: int) -> int:
        in_blk = _round_up(2 * rb, 8) * _round_up(w_in, 128) * itemsize
        out_blk = _round_up(rb, 8) * _round_up(w_out, 128) * itemsize
        scratch = _round_up(w_in, 8) * _round_up(rb, 128) * itemsize
        return 2 * (in_blk + out_blk) + scratch     # 2x for Pallas double-buffering

    # Legal block sizes: divisors of r_out that are multiples of 8 (tile rule), or r_out
    # itself (full-extent blocks are always legal).
    cands = set()
    d = 1
    while d * d <= r_out:
        if r_out % d == 0:
            for v in (d, r_out // d):
                if v % 8 == 0 or v == r_out:
                    cands.add(v)
        d += 1
    cands.add(r_out)
    cands = sorted(cands)

    fitting = [rb for rb in cands if step_bytes(rb) <= budget_bytes]
    multi_step = [rb for rb in fitting if r_out // rb >= 2]   # keep both v7x cores busy
    if multi_step:
        return max(multi_step)
    if fitting:
        return max(fitting)
    return cands[0]


def down_block(x: jax.Array, kernel_size: int = 2, stride: int = 2,
               padding: int = 0) -> jax.Array:
    """MaxPool2d forward, matching nn.MaxPool2d(2, 2, 0). x is NCHW."""
    assert kernel_size == 2 and stride == 2 and padding == 0
    n, c, h, w = x.shape
    hout, wout = h // 2, w // 2
    assert hout >= 1 and wout >= 1

    # PyTorch (ceil_mode=False) drops trailing rows/cols that don't fill a window.
    if h != 2 * hout or w != 2 * wout:
        x = x[:, :, : 2 * hout, : 2 * wout]
    h2, w2 = 2 * hout, 2 * wout

    # Free reshape: rows of this 2-D slab are image rows; output row q <- input rows
    # (2q, 2q+1) for every q, independent of (N, C) boundaries.
    r_out = n * c * hout
    x2 = x.reshape(n * c * h2, w2)

    itemsize = jnp.dtype(x.dtype).itemsize
    vmem_limit, budget = _vmem_limit_and_budget()
    rb = _pick_block_rows(r_out, w2, wout, itemsize, budget)
    grid = (r_out // rb,)

    kernel = functools.partial(_maxpool2x2_kernel, rb=rb, wout=wout)

    out2 = pl.pallas_call(
        kernel,
        out_shape=jax.ShapeDtypeStruct((r_out, wout), x.dtype),
        grid=grid,
        in_specs=[pl.BlockSpec((2 * rb, w2), lambda s: (s, 0))],
        out_specs=pl.BlockSpec((rb, wout), lambda s: (s, 0)),
        scratch_shapes=[pltpu.VMEM((w2, rb), x.dtype)],
        compiler_params=pltpu.CompilerParams(
            dimension_semantics=("parallel",),
            vmem_limit_bytes=vmem_limit,
        ),
    )(x2)

    # Free reshape back to NCHW output.
    return out2.reshape(n, c, hout, wout)


def _reference_maxpool2x2(x: jax.Array) -> jax.Array:
    """Pure-JAX reference of nn.MaxPool2d(2, 2, 0) on NCHW input."""
    n, c, h, w = x.shape
    hout, wout = h // 2, w // 2
    xr = x[:, :, : hout * 2, : wout * 2].reshape(n, c, hout, 2, wout, 2)
    return jnp.max(jnp.max(xr, axis=5), axis=3)


if __name__ == "__main__":
    key = jax.random.PRNGKey(0)
    x = jax.random.normal(key, (2, 4, 16, 16), dtype=jnp.float32)  # NCHW

    out = jax.block_until_ready(down_block(x))

    ref = _reference_maxpool2x2(x)
    assert out.shape == (2, 4, 8, 8), out.shape
    assert out.dtype == x.dtype
    assert jnp.allclose(out, ref), "Pallas maxpool does not match reference"

    print("KERNEL_OK")
</pallas_src>

<mosaic_0001>
module attributes {stable_mosaic.version = 11 : i64} {
  func.func @_maxpool2x2_kernel(%arg0: i32, %arg1: memref<64x16xf32, #tpu.memory_space<vmem>>, %arg2: memref<32x8xf32, #tpu.memory_space<vmem>>, %arg3: memref<16x32xf32, #tpu.memory_space<vmem>>) attributes {dimension_semantics = [#tpu.dimension_semantics<parallel>], iteration_bounds = array<i64: 2>, scalar_prefetch = 0 : i64, scratch_operands = 1 : i64, tpu.core_type = #tpu.core_type<tc>, window_params = [{transform_indices = @transform_0, window_bounds = array<i64: 64, 16>}, {transform_indices = @transform_1, window_bounds = array<i64: 32, 8>}]} {
    %c0 = arith.constant 0 : index
    %c0_0 = arith.constant 0 : index
    %0 = tpu.strided_load %arg1[%c0, %c0_0] {strides = array<i32: 2, 1>} : memref<64x16xf32, #tpu.memory_space<vmem>>, vector<32x16xf32>
    %c1 = arith.constant 1 : index
    %c0_1 = arith.constant 0 : index
    %1 = tpu.strided_load %arg1[%c1, %c0_1] {strides = array<i32: 2, 1>} : memref<64x16xf32, #tpu.memory_space<vmem>>, vector<32x16xf32>
    %2 = arith.maximumf %0, %1 : vector<32x16xf32>
    %3 = tpu.transpose %2, [1, 0] : vector<32x16xf32> -> vector<16x32xf32>
    %c0_2 = arith.constant 0 : index
    %c0_3 = arith.constant 0 : index
    %4 = vector.load %arg3[%c0_2, %c0_3] : memref<16x32xf32, #tpu.memory_space<vmem>>, vector<16x32xf32>
    tpu.vector_store %arg3[%c0_2, %c0_3], %3 {strides = array<i32>} : memref<16x32xf32, #tpu.memory_space<vmem>>, vector<16x32xf32>,
    %c0_4 = arith.constant 0 : index
    %c0_5 = arith.constant 0 : index
    %5 = tpu.strided_load %arg3[%c0_4, %c0_5] {strides = array<i32: 2, 1>} : memref<16x32xf32, #tpu.memory_space<vmem>>, vector<8x32xf32>
    %c1_6 = arith.constant 1 : index
    %c0_7 = arith.constant 0 : index
    %6 = tpu.strided_load %arg3[%c1_6, %c0_7] {strides = array<i32: 2, 1>} : memref<16x32xf32, #tpu.memory_space<vmem>>, vector<8x32xf32>
    %7 = arith.maximumf %5, %6 : vector<8x32xf32>
    %8 = tpu.transpose %7, [1, 0] : vector<8x32xf32> -> vector<32x8xf32>
    %c0_8 = arith.constant 0 : index
    %c0_9 = arith.constant 0 : index
    %9 = vector.load %arg2[%c0_8, %c0_9] : memref<32x8xf32, #tpu.memory_space<vmem>>, vector<32x8xf32>
    tpu.vector_store %arg2[%c0_8, %c0_9], %8 {strides = array<i32>} : memref<32x8xf32, #tpu.memory_space<vmem>>, vector<32x8xf32>,
    return
  }
  func.func @transform_0(%arg0: i32) -> (i32, i32) {
    %c0_i32 = arith.constant 0 : i32
    %c0_i32_0 = arith.constant 0 : i32
    return %arg0, %c0_i32 : i32, i32
  }
  func.func @transform_1(%arg0: i32) -> (i32, i32) {
    %c0_i32 = arith.constant 0 : i32
    %c0_i32_0 = arith.constant 0 : i32
    return %arg0, %c0_i32 : i32, i32
  }
}

</mosaic_0001>

<bundles_post_ra>
// kernel: tpu_custom_call.1
= control target key start
LH: loop header
LB: loop body
LE: loop exit
PB: predicated region body
PF: predicated region fallthrough
CT: control target
= control target key end

     0   :  { %s316_s6 = smov 0   ;;  %s337_s0 = inlined_call_operand.vmem [shape: f32[128,16], index: 0, kind: input, shape index: {}]   ;;  %s338_s1 = inlined_call_operand.vmem [shape: f32[64,8], index: 1, kind: output, shape index: {}]  }
   0x1 LB: > { %s271_s7 = sadd.s32 4294967295, %s304_s6   ;;  %p275_p0 = scmp.ge.s32.totalorder %s304_s6, 1  ;;  %s304_s6 = sphi %s316_s6, %s11_s6  }
   0x2   : > { %p88_p1 = scmp.lt.s32.totalorder %s304_s6, 3 }
   0x4   : > { %p89_p2 = pnand %p275_p0, %p88_p1 }
   0x5   : > { %s276_s8 = sshll.u32 (!%p89_p2), %s271_s7, 3  ;;  %s278_s13 = sshll.u32 (!%p89_p2), %s271_s7, 2 }
   0x6   : > { %92 = sbr.rel (%p89_p2) target bundleno = 294 (0x126), region = 24  ;;  %p109_p3 = scmp.lt.s32.totalorder (!%p89_p2), %s276_s8, 15 }
   0x7   : > { %p115_p4 = scmp.lt.s32.totalorder (!%p89_p2), %s278_s13, 7 }
   0xb   : > { %s340_s8 = smov (!%p109_p3, %s276_s8), 15  ;;  %vm171_vm0 = vcmask 261120   ;;  %s342_s13 = smov (!%p115_p4, %s278_s13), 7  ;;  %vm210_vm1 = vcmask 64512  }
   0xc   : > { %s277_s9 = sshll.u32 %s340_s8, 3  ;;  %s279_s14 = sshll.u32 %s342_s13, 3 }
   0xd   : > { %s112_s12 = scalar_lea.vmem %s337_s0, %s277_s9  ;;  %s118_s17 = scalar_lea.vmem %s338_s1, %s279_s14 }
   0xe   : > { %v120_v0 = vld [vmem:[%s112_s12] ss:$2 sm:$0xff]  ;;  %v283_v1 = vld [vmem:[%s112_s12 + $0x1] ss:$2 sm:$0xff]  ;;  %v280_v2 = vld [vmem:[%s112_s12 + $0x10] ss:$2 sm:$0xff] }
   0xf   : > { %v135_v3 = vmax.f32 %v120_v0, %v283_v1  ;;  %v284_v4 = vld [vmem:[%s112_s12 + $0x11] ss:$2 sm:$0xff]  ;;  %v281_v6 = vld [vmem:[%s112_s12 + $0x20] ss:$2 sm:$0xff]  ;;  %v285_v7 = vld [vmem:[%s112_s12 + $0x21] ss:$2 sm:$0xff] }
  0x10   : > { %v136_v5 = vmax.f32 %v280_v2, %v284_v4  ;;  %v137_v8 = vmax.f32 %v281_v6, %v285_v7  ;;  %v282_v9 = vld [vmem:[%s112_s12 + $0x30] ss:$2 sm:$0xff]  ;;  %v286_v10 = vld [vmem:[%s112_s12 + $0x31] ss:$2 sm:$0xff] }
  0x11   : > { %139 = vxpose.xlu0.b32.start [1/4] (short) (narrow) %v135_v3, 16  ;;  %v138_v11 = vmax.f32 %v282_v9, %v286_v10 }
  0x15   : > { %140 = vxpose.xlu0.b32.cont [2/4] (short) (narrow) %v136_v5, 16 }
  0x19   : > { %141 = vxpose.xlu0.b32.cont [3/4] (short) (narrow) %v137_v8, 16 }
  0x1d   : > { %142 = vxpose.xlu0.b32.end [4/4] (short) (narrow) %v138_v11, 16 }
  0x8d   : > { %v155_v12 = vpop.trf.xlu0 }
  0x8e   : > { %172 = vst.msk [vmem:[#allocation2] sm:$0xff] %vm171_vm0, %v155_v12 }
  0x91   : > { %v156_v13 = vpop.trf.xlu0 }
  0x92   : > { %173 = vst.msk [vmem:[#allocation2 + $0x8] sm:$0xff] %vm171_vm0, %v156_v13 }
  0x99   : > { %v174_v14 = vld [vmem:[#allocation2] ss:$2 sm:$0xff]  ;;  %v176_v15 = vld [vmem:[#allocation2 + $0x1] ss:$2 sm:$0xff] }
  0x9a   : > { %v177_v16 = vmax.f32 %v174_v14, %v176_v15 }
  0x9c   : > { %178 = vxpose.xlu1.b32.start.end [1/1] (short) (narrow) %v177_v16, 32 }
 0x118   : > { %v194_v17 = vpop.trf.xlu1 }
 0x119   : > { %211 = vst.msk [vmem:[%s118_s17] sm:$0xff] %vm210_vm1, %v194_v17 }
 0x11c   : > { %v195_v18 = vpop.trf.xlu1 }
 0x11d   : > { %212 = vst.msk [vmem:[%s118_s17 + $0x8] sm:$0xff] %vm210_vm1, %v195_v18 }
 0x120   : > { %v196_v19 = vpop.trf.xlu1 }
 0x121   : > { %213 = vst.msk [vmem:[%s118_s17 + $0x10] sm:$0xff] %vm210_vm1, %v196_v19 }
 0x124   : > { %v197_v20 = vpop.trf.xlu1 }
 0x125   : > { %214 = vst.msk [vmem:[%s118_s17 + $0x18] sm:$0xff] %vm210_vm1, %v197_v20 }
 0x126 PF: > { %s11_s6 = sadd.s32 1, %s304_s6  }
 0x127   : > { %p8_p5 = scmp.ge.s32.totalorder %s11_s6, 4  }
 0x129   :  { %10 = sbr.rel (!%p8_p5) target bundleno = 1 (0x1), region = 62 }

</bundles_post_ra>
